<compile_context>
chip_gen: v5e
topology: v5e:2x2
jax: 0.10.0
libtpu: 0.0.40
codegen_flags: <defaults>
</compile_context>

<pallas_src>
import jax
import jax.numpy as jnp
from jax.experimental import pallas as pl
from jax.experimental.pallas import tpu as pltpu

_LANE = 128
_SUBLANE = 16  # bf16 packs 2 rows per sublane; 16 also covers the f32 (8) constraint.


def _round_up(x, m):
    return ((x + m - 1) // m) * m


def _cdiv(a, b):
    return -(-a // b)


def _mlp_kernel(x_ref, w1_ref, b1_ref, w2_ref, b2_ref, o_ref):
    """One batch tile: o = relu(x @ W1 + b1) @ W2 + b2.

    x arrives as f32 straight from HBM and is cast to bf16 on the VPU (hidden under
    DMA/MXU slack); both dots accumulate in f32 on the MXU; bias-add and ReLU stay
    f32 on the VPU; the lane-dense (padded-N) result is stored as bf16.
    """
    x = x_ref[...].astype(jnp.bfloat16)                              # (bm, K)
    h = jnp.dot(x, w1_ref[...], preferred_element_type=jnp.float32)  # (bm, K) f32
    h = jnp.maximum(h + b1_ref[...], 0.0)                            # f32 ReLU
    y = jnp.dot(h.astype(jnp.bfloat16), w2_ref[...],
                preferred_element_type=jnp.float32)                  # (bm, N_pad) f32
    o_ref[...] = (y + b2_ref[...]).astype(o_ref.dtype)               # bf16 store


def _vmem_budget_bytes(bm, k, n_pad):
    # Pipelined I/O tiles (double-buffered) + resident weights/biases, 2x headroom,
    # clamped to [16 MiB, 48 MiB] (48 MiB keeps headroom under v7x's 64 MiB VMEM).
    per_step = bm * k * 4 + bm * n_pad * 2          # x tile (f32 in) + out tile (bf16)
    resident = k * k * 2 + k * n_pad * 2 + (k + n_pad) * 4
    total = 2 * (2 * per_step + resident)
    return int(min(max(total, 16 << 20), 48 << 20))


def prepare_sonar_params(w1, b1, w2, b2):
    """One-time host-side prep (hoisted out of the per-call wrapper).

    Casts W1/W2 to bf16 (MXU-native inputs), lane-pads the output projection to a
    multiple of 128 columns (zero columns) so the kernel's second matmul and output
    stores are lane-dense, and reshapes the biases to broadcastable (1, cols) f32.
    """
    K = w1.shape[0]
    assert w1.shape == (K, K) and w2.shape[0] == K
    N = w2.shape[1]
    N_pad = _round_up(max(N, _LANE), _LANE)
    w1c = w1.astype(jnp.bfloat16)
    w2c = w2.astype(jnp.bfloat16)
    b2c = b2.astype(jnp.float32)
    if N_pad != N:
        w2c = jnp.pad(w2c, ((0, 0), (0, N_pad - N)))
        b2c = jnp.pad(b2c, (0, N_pad - N))
    b1c = b1.astype(jnp.float32).reshape(1, K)
    b2c = b2c.reshape(1, N_pad)
    return (w1c, b1c, w2c, b2c, N)


def sonar_predictor_forward(rnn_out, params, *, block_b=8192):
    """SonarPredictor MLP head on TPU via Pallas.

    rnn_out: (B, rnn_size) activations (f32 or bf16; cast happens inside the kernel)
    params:  output of prepare_sonar_params(w1, b1, w2, b2)
    returns: (B, out_size) in rnn_out.dtype
    """
    w1c, b1c, w2c, b2c, out_size = params
    B, K = rnn_out.shape
    assert w1c.shape == (K, K)
    N_pad = w2c.shape[1]

    # Large, sublane-aligned batch tile (amortizes per-step pipeline overhead),
    # shrunk for small batches.  Nudge the grid to an even length when >1 so the
    # "parallel" batch axis balances across v7x's two TensorCores; for tiny B we
    # just accept a single-step launch.
    bm = _round_up(min(block_b, _round_up(B, _SUBLANE)), _SUBLANE)
    n_tiles = _cdiv(B, bm)
    if n_tiles > 1 and n_tiles % 2 == 1:
        bm = _round_up(_cdiv(B, n_tiles + 1), _SUBLANE)
        n_tiles = _cdiv(B, bm)

    cost = pl.CostEstimate(
        flops=2 * B * K * (K + N_pad),
        transcendentals=0,
        bytes_accessed=int(B * K * rnn_out.dtype.itemsize
                           + w1c.size * 2 + w2c.size * 2
                           + (K + N_pad) * 4
                           + B * N_pad * 2),
    )

    out = pl.pallas_call(
        _mlp_kernel,
        out_shape=jax.ShapeDtypeStruct((B, N_pad), jnp.bfloat16),
        grid_spec=pl.GridSpec(
            grid=(n_tiles,),
            in_specs=[
                pl.BlockSpec((bm, K), lambda i: (i, 0)),     # x tile (cast in-kernel)
                pl.BlockSpec((K, K), lambda i: (0, 0)),      # W1 (resident)
                pl.BlockSpec((1, K), lambda i: (0, 0)),      # b1
                pl.BlockSpec((K, N_pad), lambda i: (0, 0)),  # W2 (resident, lane-padded)
                pl.BlockSpec((1, N_pad), lambda i: (0, 0)),  # b2
            ],
            out_specs=pl.BlockSpec((bm, N_pad), lambda i: (i, 0)),
        ),
        compiler_params=pltpu.CompilerParams(
            dimension_semantics=("parallel",),   # batch axis -> shard across TCs (v7x)
            vmem_limit_bytes=_vmem_budget_bytes(bm, K, N_pad),
        ),
        cost_estimate=cost,
    )(rnn_out, w1c, b1c, w2c, b2c)

    # Strip lane padding; return in the caller's dtype (torch keeps dtype).
    return out[:, :out_size].astype(rnn_out.dtype)


def _torch_like_linear_init(key, fan_in, fan_out):
    """Deterministic init mimicking torch.nn.Linear defaults (uniform +-1/sqrt(fan_in))."""
    kw, kb = jax.random.split(key)
    bound = 1.0 / jnp.sqrt(float(fan_in))
    # torch stores weight as (out, in); we store it transposed as (in, out).
    w_t = jax.random.uniform(kw, (fan_in, fan_out), jnp.float32, -bound, bound)
    b = jax.random.uniform(kb, (fan_out,), jnp.float32, -bound, bound)
    return w_t, b


def reference_forward_f32(x, w1, b1, w2, b2):
    h = jnp.maximum(x @ w1 + b1, 0.0)
    return h @ w2 + b2


def reference_forward_quantized(x, w1, b1, w2, b2):
    # Same bf16 quantization of x/W1/W2 as the kernel, f32 accumulation, and the
    # same bf16 rounding of the stored output.
    q = lambda a: a.astype(jnp.bfloat16).astype(jnp.float32)
    h = jnp.maximum(q(x) @ q(w1) + b1, 0.0)
    y = q(h) @ q(w2) + b2
    return y.astype(jnp.bfloat16).astype(jnp.float32)


if __name__ == "__main__":
    # Small shapes consistent with the module: rnn_size hidden, out_size sonar pred.
    # B deliberately NOT a multiple of the small tile so the clipped-last-tile path runs.
    B = 40
    rnn_size = 128
    out_size = 8

    key = jax.random.PRNGKey(0)
    k_x, k_l1, k_l2 = jax.random.split(key, 3)

    rnn_out = jax.random.normal(k_x, (B, rnn_size), jnp.float32)
    w1, b1 = _torch_like_linear_init(k_l1, rnn_size, rnn_size)
    w2, b2 = _torch_like_linear_init(k_l2, rnn_size, out_size)

    params = prepare_sonar_params(w1, b1, w2, b2)   # hoisted: done once, not per call

    # Default-tile path: whole batch in one big sublane-aligned tile.
    y = jax.block_until_ready(sonar_predictor_forward(rnn_out, params))
    assert y.shape == (B, out_size)

    y_q_ref = reference_forward_quantized(rnn_out, w1, b1, w2, b2)
    y_f_ref = reference_forward_f32(rnn_out, w1, b1, w2, b2)

    # Tight check vs. the identically-quantized reference (bf16 in, f32 accum, bf16 out).
    assert jnp.allclose(y, y_q_ref, atol=2e-2, rtol=2e-2), "mismatch vs. quantized reference"
    # Loose sanity check vs. the full-f32 torch-equivalent reference.
    assert jnp.allclose(y, y_f_ref, atol=8e-2, rtol=8e-2), "mismatch vs. f32 reference"

    # Small-tile path: multi-step "parallel" grid + boundary clipping (40 % 16 != 0).
    y2 = jax.block_until_ready(sonar_predictor_forward(rnn_out, params, block_b=16))
    assert y2.shape == (B, out_size)
    assert jnp.allclose(y2, y_q_ref, atol=2e-2, rtol=2e-2), "mismatch on multi-tile path"

    # TODO(synk): calc_loss / AvgLoss (MSE against clamped sonar target) is training-only
    # glue, not part of forward(); left in plain JAX if ever needed.
    print("KERNEL_OK")
</pallas_src>

<mosaic_0001>
module attributes {stable_mosaic.version = 11 : i64} {
  func.func @_mlp_kernel(%arg0: i32, %arg1: memref<48x128xf32, #tpu.memory_space<vmem>>, %arg2: memref<128x128xbf16, #tpu.memory_space<vmem>>, %arg3: memref<1x128xf32, #tpu.memory_space<vmem>>, %arg4: memref<128x128xbf16, #tpu.memory_space<vmem>>, %arg5: memref<1x128xf32, #tpu.memory_space<vmem>>, %arg6: memref<48x128xbf16, #tpu.memory_space<vmem>>) attributes {dimension_semantics = [#tpu.dimension_semantics<parallel>], iteration_bounds = array<i64: 1>, scalar_prefetch = 0 : i64, scratch_operands = 0 : i64, tpu.core_type = #tpu.core_type<tc>, window_params = [{transform_indices = @transform_0, window_bounds = array<i64: 48, 128>}, {pipeline_mode = #tpu.pipeline_mode<synchronous>, transform_indices = @transform_1, window_bounds = array<i64: 128, 128>}, {pipeline_mode = #tpu.pipeline_mode<synchronous>, transform_indices = @transform_2, window_bounds = array<i64: 1, 128>}, {pipeline_mode = #tpu.pipeline_mode<synchronous>, transform_indices = @transform_3, window_bounds = array<i64: 128, 128>}, {pipeline_mode = #tpu.pipeline_mode<synchronous>, transform_indices = @transform_4, window_bounds = array<i64: 1, 128>}, {transform_indices = @transform_5, window_bounds = array<i64: 48, 128>}]} {
    %c0 = arith.constant 0 : index
    %c0_0 = arith.constant 0 : index
    %0 = vector.load %arg1[%c0, %c0_0] : memref<48x128xf32, #tpu.memory_space<vmem>>, vector<48x128xf32>
    %1 = arith.truncf %0 : vector<48x128xf32> to vector<48x128xbf16>
    %c0_1 = arith.constant 0 : index
    %c0_2 = arith.constant 0 : index
    %2 = vector.load %arg2[%c0_1, %c0_2] : memref<128x128xbf16, #tpu.memory_space<vmem>>, vector<128x128xbf16>
    %cst = arith.constant dense<0.000000e+00> : vector<48x128xf32>
    %3 = tpu.matmul %1, %2, %cst {dimension_numbers = #tpu.dot_dimension_numbers<[1], [0], [0], [1], [0, 0, 1, 1], [], []>} : vector<48x128xbf16>, vector<128x128xbf16>, vector<48x128xf32> -> vector<48x128xf32>
    %c0_3 = arith.constant 0 : index
    %c0_4 = arith.constant 0 : index
    %4 = vector.load %arg3[%c0_3, %c0_4] : memref<1x128xf32, #tpu.memory_space<vmem>>, vector<1x128xf32>
    %5 = vector.broadcast %4 : vector<1x128xf32> to vector<48x128xf32>
    %6 = arith.addf %3, %5 : vector<48x128xf32>
    %cst_5 = arith.constant 0.000000e+00 : f32
    %7 = vector.broadcast %cst_5 : f32 to vector<48x128xf32>
    %8 = arith.maximumf %6, %7 : vector<48x128xf32>
    %9 = arith.truncf %8 : vector<48x128xf32> to vector<48x128xbf16>
    %c0_6 = arith.constant 0 : index
    %c0_7 = arith.constant 0 : index
    %10 = vector.load %arg4[%c0_6, %c0_7] : memref<128x128xbf16, #tpu.memory_space<vmem>>, vector<128x128xbf16>
    %cst_8 = arith.constant dense<0.000000e+00> : vector<48x128xf32>
    %11 = tpu.matmul %9, %10, %cst_8 {dimension_numbers = #tpu.dot_dimension_numbers<[1], [0], [0], [1], [0, 0, 1, 1], [], []>} : vector<48x128xbf16>, vector<128x128xbf16>, vector<48x128xf32> -> vector<48x128xf32>
    %c0_9 = arith.constant 0 : index
    %c0_10 = arith.constant 0 : index
    %12 = vector.load %arg5[%c0_9, %c0_10] : memref<1x128xf32, #tpu.memory_space<vmem>>, vector<1x128xf32>
    %13 = vector.broadcast %12 : vector<1x128xf32> to vector<48x128xf32>
    %14 = arith.addf %11, %13 : vector<48x128xf32>
    %15 = arith.truncf %14 : vector<48x128xf32> to vector<48x128xbf16>
    %c0_11 = arith.constant 0 : index
    %c0_12 = arith.constant 0 : index
    %16 = vector.load %arg6[%c0_11, %c0_12] : memref<48x128xbf16, #tpu.memory_space<vmem>>, vector<48x128xbf16>
    tpu.vector_store %arg6[%c0_11, %c0_12], %15 {strides = array<i32>} : memref<48x128xbf16, #tpu.memory_space<vmem>>, vector<48x128xbf16>,
    return
  }
  func.func @transform_0(%arg0: i32) -> (i32, i32) {
    %c0_i32 = arith.constant 0 : i32
    %c0_i32_0 = arith.constant 0 : i32
    return %arg0, %c0_i32 : i32, i32
  }
  func.func @transform_1(%arg0: i32) -> (i32, i32) {
    %c0_i32 = arith.constant 0 : i32
    %c0_i32_0 = arith.constant 0 : i32
    %c0_i32_1 = arith.constant 0 : i32
    return %c0_i32, %c0_i32_0 : i32, i32
  }
  func.func @transform_2(%arg0: i32) -> (i32, i32) {
    %c0_i32 = arith.constant 0 : i32
    %c0_i32_0 = arith.constant 0 : i32
    %c0_i32_1 = arith.constant 0 : i32
    return %c0_i32, %c0_i32_0 : i32, i32
  }
  func.func @transform_3(%arg0: i32) -> (i32, i32) {
    %c0_i32 = arith.constant 0 : i32
    %c0_i32_0 = arith.constant 0 : i32
    %c0_i32_1 = arith.constant 0 : i32
    return %c0_i32, %c0_i32_0 : i32, i32
  }
  func.func @transform_4(%arg0: i32) -> (i32, i32) {
    %c0_i32 = arith.constant 0 : i32
    %c0_i32_0 = arith.constant 0 : i32
    %c0_i32_1 = arith.constant 0 : i32
    return %c0_i32, %c0_i32_0 : i32, i32
  }
  func.func @transform_5(%arg0: i32) -> (i32, i32) {
    %c0_i32 = arith.constant 0 : i32
    %c0_i32_0 = arith.constant 0 : i32
    return %arg0, %c0_i32 : i32, i32
  }
}

</mosaic_0001>

<bundles_post_ra>
// kernel: tpu_custom_call.1
= control target key start
LH: loop header
LB: loop body
LE: loop exit
PB: predicated region body
PF: predicated region fallthrough
CT: control target
= control target key end

     0   :  { %10 = vsyncpa [#allocation3], 0  ;;  %s592_s0 = inlined_call_operand.hbm [shape: f32[40,128], index: 0, kind: input, shape index: {}]   ;;  %s593_s1 = inlined_call_operand.hbm [shape: bf16[128,128], index: 1, kind: input, shape index: {}]   ;;  %s594_s2 = inlined_call_operand.vmem [shape: f32[1,128], index: 2, kind: input, shape index: {}]   ;;  %s595_s3 = inlined_call_operand.hbm [shape: bf16[128,128], index: 3, kind: input, shape index: {}]   ;;  %s596_s4 = inlined_call_operand.vmem [shape: f32[1,128], index: 4, kind: input, shape index: {}]   ;;  %s597_s5 = inlined_call_operand.hbm [shape: bf16[40,128], index: 5, kind: output, shape index: {}]  }
   0x1   :  { %11 = vsyncpa [#allocation6], 0 }
   0x2   :  { %12 = vsyncpa [#allocation4], 0  ;;  %s30_s20 = sshll.u32 %s593_s1, 4  ;;  %s31_s20 = int_to_ptr.hbm [resolvable:$true] %s30_s20 }
   0x3   :  { %16 = vsyncadd [#allocation3], 128  ;;  %s527_s21 = smov [#allocation5]   ;;  %s17_s25 = sshll.u32 %s592_s0, 4  ;;  %s18_s25 = int_to_ptr.hbm [resolvable:$true] %s17_s25 }
   0x4   :  { %s32_s22 = sshll.u32 %s527_s21, 4  ;;  %s528_s26 = smov 64   ;;  %s33_s22 = int_to_ptr.vmem [resolvable:$true] %s32_s22 }
   0x5   :  { %s529_s27 = smov 4   ;;  %s530_s28 = smov [#allocation2]  }
   0x6   :  { %38 = dma.hbm_to_vmem [thread:$0]  %s31_s20, 1024, %s33_s22, [#allocation6], %s528_s26, %s528_s26, %s529_s27  }
   0x7   :  { %s19_s29 = sshll.u32 %s530_s28, 4  ;;  %s531_s1 = smov 128   ;;  %s20_s29 = int_to_ptr.vmem [resolvable:$true] %s19_s29 }
   0x8   :  { %s532_s30 = smov 8   ;;  %s45_s8 = sshll.u32 %s595_s3, 4  ;;  %s46_s8 = int_to_ptr.hbm [resolvable:$true] %s45_s8 }
   0x9   :  { %25 = dma.hbm_to_vmem [thread:$0]  %s18_s25, 640, %s20_s29, [#allocation3], %s531_s1, %s531_s1, %s532_s30  }
   0xa   :  { %s533_s9 = smov [#allocation7]  }
   0xb   :  { %s47_s0 = sshll.u32 %s533_s9, 4  ;;  %s48_s0 = int_to_ptr.vmem [resolvable:$true] %s47_s0 }
   0xc   :  { %53 = dma.hbm_to_vmem [thread:$0]  %s46_s8, 1024, %s48_s0, [#allocation6], %s528_s26, %s528_s26, %s529_s27  }
   0xd   :  { %521 = dma.done.wait [#allocation3], 768  }
   0xe   :  { %522 = vsyncadd [#allocation3], 4294966528 }
   0xf   :  { %523 = dma.done.wait [#allocation6], 2048  }
  0x10   :  { %524 = vsyncadd [#allocation6], 4294965248  ;;  %v373_v0 = vld [vmem:[#allocation5 + $0x38] sm:$0xff]  ;;  %v372_v1 = vld [vmem:[#allocation5 + $0x30] sm:$0xff] }
  0x11   :  { %399 = vmatpush.bf16.msra.mxu2 %v373_v0  ;;  %145 = vmatpush.bf16.msra.mxu0 %v373_v0  ;;  %v371_v2 = vld [vmem:[#allocation5 + $0x28] sm:$0xff]  ;;  %v370_v3 = vld [vmem:[#allocation5 + $0x20] sm:$0xff]  ;;  %v369_v4 = vld [vmem:[#allocation5 + $0x18] sm:$0xff] }
  0x12   :  { %v381_v5 = vld [vmem:[#allocation7 + $0x38] sm:$0xff]  ;;  %v368_v6 = vld [vmem:[#allocation5 + $0x10] sm:$0xff]  ;;  %v367_v8 = vld [vmem:[#allocation5 + $0x8] sm:$0xff] }
  0x13   :  { %407 = vmatpush.bf16.msra.mxu3 %v381_v5  ;;  %v380_v7 = vld [vmem:[#allocation7 + $0x30] sm:$0xff]  ;;  %246 = vmatpush.bf16.msra.mxu1 %v381_v5  ;;  %v379_v9 = vld [vmem:[#allocation7 + $0x28] sm:$0xff]  ;;  %v366_v10 = vld [vmem:[#allocation5] sm:$0xff] }
  0x14   :  { %v70_v11 = vld [vmem:[#allocation2 + $0x10] sm:$0xff]  ;;  %v71_v12 = vld [vmem:[#allocation2 + $0x18] sm:$0xff]  ;;  %v68_v13 = vld [vmem:[#allocation2] sm:$0xff] }
  0x15   :  { %400 = vmatpush.bf16.msra.mxu2 %v372_v1  ;;  %146 = vmatpush.bf16.msra.mxu0 %v372_v1  ;;  %v69_v14 = vld [vmem:[#allocation2 + $0x8] sm:$0xff]  ;;  %v378_v15 = vld [vmem:[#allocation7 + $0x20] sm:$0xff]  ;;  %v75_v16 = vpack.c.bf16 %v71_v12, %v70_v11  ;;  %v72_v18 = vld [vmem:[#allocation2 + $0x20] sm:$0xff] }
  0x16   :  { %v74_v17 = vpack.c.bf16 %v69_v14, %v68_v13  ;;  %v73_v19 = vld [vmem:[#allocation2 + $0x28] sm:$0xff]  ;;  %v376_v22 = vld [vmem:[#allocation7 + $0x10] sm:$0xff]  ;;  %v375_v23 = vld [vmem:[#allocation7 + $0x8] sm:$0xff] }
  0x17   :  { %408 = vmatpush.bf16.msra.mxu3 %v380_v7  ;;  %247 = vmatpush.bf16.msra.mxu1 %v380_v7  ;;  %v76_v20 = vpack.c.bf16 %v73_v19, %v72_v18  ;;  %v377_v21 = vld [vmem:[#allocation7 + $0x18] sm:$0xff]  ;;  %v374_v24 = vld [vmem:[#allocation7] sm:$0xff]  ;;  %v423_v26 = vld [vmem:[%s594_s2] ss:$0 sm:$0xff] }
  0x18   :  { %v424_v48 = vld [vmem:[%s596_s4] ss:$0 sm:$0xff] }
  0x19   :  { %401 = vmatpush.bf16.msra.mxu2 %v371_v2  ;;  %147 = vmatpush.bf16.msra.mxu0 %v371_v2 }
  0x1b   :  { %409 = vmatpush.bf16.msra.mxu3 %v379_v9  ;;  %248 = vmatpush.bf16.msra.mxu1 %v379_v9 }
  0x1d   :  { %402 = vmatpush.bf16.msra.mxu2 %v370_v3  ;;  %148 = vmatpush.bf16.msra.mxu0 %v370_v3 }
  0x1f   :  { %410 = vmatpush.bf16.msra.mxu3 %v378_v15  ;;  %249 = vmatpush.bf16.msra.mxu1 %v378_v15 }
  0x21   :  { %403 = vmatpush.bf16.msra.mxu2 %v369_v4  ;;  %149 = vmatpush.bf16.msra.mxu0 %v369_v4 }
  0x23   :  { %411 = vmatpush.bf16.msra.mxu3 %v377_v21  ;;  %250 = vmatpush.bf16.msra.mxu1 %v377_v21 }
  0x25   :  { %404 = vmatpush.bf16.msra.mxu2 %v368_v6  ;;  %150 = vmatpush.bf16.msra.mxu0 %v368_v6 }
  0x27   :  { %412 = vmatpush.bf16.msra.mxu3 %v376_v22  ;;  %251 = vmatpush.bf16.msra.mxu1 %v376_v22 }
  0x29   :  { %405 = vmatpush.bf16.msra.mxu2 %v367_v8  ;;  %151 = vmatpush.bf16.msra.mxu0 %v367_v8 }
  0x2b   :  { %413 = vmatpush.bf16.msra.mxu3 %v375_v23  ;;  %252 = vmatpush.bf16.msra.mxu1 %v375_v23 }
  0x2d   :  { %406 = vmatpush.bf16.msra.mxu2 %v366_v10  ;;  %152 = vmatpush.bf16.msra.mxu0 %v366_v10 }
  0x2f   :  { %414 = vmatpush.bf16.msra.mxu3 %v374_v24  ;;  %253 = vmatpush.bf16.msra.mxu1 %v374_v24 }
  0x30   :  { %158 = vmatmul.bf16.vlgmr.msra.gmra.mxu2 %v75_v16  ;;  %153 = vmatmul.bf16.vlgmr.msra.gmra.mxu0 %v74_v17 }
  0x40   :  { %163 = vmatmul.bf16.gmra.mxu2 %v76_v20 }
  0xad   :  { %v154_v25 = vpop.f32.mrf.mxu0 }
  0xae   :  { %v155_v27 = vadd.f32 %v423_v26, %v154_v25 }
  0xb0   :  { %v169_v30 = vmax.f32 %v155_v27, 0.0 }
  0xb3   :  { %v159_v28 = vpop.f32.mrf.mxu2 }
  0xb4   :  { %v160_v33 = vadd.f32 %v423_v26, %v159_v28 }
  0xb5   :  { %v156_v29 = vpop.f32.mrf.mxu0 }
  0xb6   :  { %v157_v31 = vadd.f32 %v423_v26, %v156_v29  ;;  %v171_v37 = vmax.f32 %v160_v33, 0.0 }
  0xb8   :  { %v170_v32 = vmax.f32 %v157_v31, 0.0 }
  0xba   :  { %v175_v34 = vpack.c.bf16 %v170_v32, %v169_v30 }
  0xbb   :  { %v161_v35 = vpop.f32.mrf.mxu2 }
  0xbc   :  { %v162_v36 = vadd.f32 %v423_v26, %v161_v35  ;;  %254 = vmatmul.bf16.vlgmr.msra.gmra.mxu1 %v175_v34 }
  0xbe   :  { %v172_v38 = vmax.f32 %v162_v36, 0.0 }
  0xc0   :  { %v176_v39 = vpack.c.bf16 %v172_v38, %v171_v37 }
  0xc2   :  { %259 = vmatmul.bf16.vlgmr.msra.gmra.mxu3 %v176_v39 }
  0xc3   :  { %v164_v40 = vpop.f32.mrf.mxu2 }
  0xc4   :  { %v165_v41 = vadd.f32 %v423_v26, %v164_v40 }
  0xc6   :  { %v173_v44 = vmax.f32 %v165_v41, 0.0 }
  0xcb   :  { %v166_v42 = vpop.f32.mrf.mxu2 }
  0xcc   :  { %v167_v43 = vadd.f32 %v423_v26, %v166_v42 }
  0xce   :  { %v174_v45 = vmax.f32 %v167_v43, 0.0 }
  0xd0   :  { %v177_v46 = vpack.c.bf16 %v174_v45, %v173_v44 }
  0xd2   :  { %264 = vmatmul.bf16.gmra.mxu3 %v177_v46 }
 0x139   :  { %v255_v47 = vpop.f32.mrf.mxu1 }
 0x13a   :  { %v256_v49 = vadd.f32 %v424_v48, %v255_v47 }
 0x141   :  { %v257_v50 = vpop.f32.mrf.mxu1 }
 0x142   :  { %v258_v51 = vadd.f32 %v424_v48, %v257_v50 }
 0x144   :  { %v385_v52 = vpack.c.bf16 %v258_v51, %v256_v49 }
 0x145   :  { %v260_v53 = vpop.f32.mrf.mxu3 }
 0x146   :  { %386 = vst [vmem:[#allocation8] sm:$0xff] %v385_v52   ;;  %v261_v55 = vadd.f32 %v424_v48, %v260_v53 }
 0x14d   :  { %v262_v54 = vpop.f32.mrf.mxu3 }
 0x14e   :  { %v263_v56 = vadd.f32 %v424_v48, %v262_v54 }
 0x150   :  { %v390_v57 = vpack.c.bf16 %v263_v56, %v261_v55 }
 0x152   :  { %397 = vst [vmem:[#allocation8 + $0x8] sm:$0xff] %v390_v57  }
 0x155   :  { %v265_v58 = vpop.f32.mrf.mxu3 }
 0x156   :  { %v266_v60 = vadd.f32 %v424_v48, %v265_v58 }
 0x15d   :  { %v267_v59 = vpop.f32.mrf.mxu3 }
 0x15e   :  { %v268_v61 = vadd.f32 %v424_v48, %v267_v59 }
 0x160   :  { %v395_v62 = vpack.c.bf16 %v268_v61, %v266_v60 }
 0x162   :  { %398 = vst [vmem:[#allocation8 + $0x10] sm:$0xff] %v395_v62  }
 0x163   :  { %285 = vsyncadd [#allocation4], 64  ;;  %s288_s13 = sshll.u32 %s597_s5, 4  ;;  %s534_s14 = smov [#allocation8]   ;;  %s289_s13 = int_to_ptr.hbm [resolvable:$true] %s288_s13 }
 0x164   :  { %s286_s15 = sshll.u32 %s534_s14, 4  ;;  %s287_s15 = int_to_ptr.vmem [resolvable:$true] %s286_s15 }
 0x165   :  { %294 = dma.vmem_to_hbm [thread:$0]  %s287_s15, 320, %s289_s13, [#allocation4], %s528_s26, %s528_s26, %s529_s27  }
 0x166   :  { %525 = dma.done.wait [#allocation4], 384  }
 0x167   :  { %526 = vsyncadd [#allocation4], 4294966912 }
 0x168   :  { %299 = vsyncpa [#allocation3], 1 }
 0x169   :  { %300 = vsyncpa [#allocation6], 1 }
 0x16a   :  { %301 = vsyncpa [#allocation4], 1 }

</bundles_post_ra>
